<compile_context>
chip_gen: v6e
topology: v6e:2x2x1
jax: 0.10.0
libtpu: 0.0.40
codegen_flags: <defaults>
</compile_context>

<pallas_src>
import jax
import jax.numpy as jnp
from jax import lax
from jax.experimental import pallas as pl
from jax.experimental.pallas import tpu as pltpu


def _round_up(x, m):
    return ((x + m - 1) // m) * m


# ----------------------------------------------------------------------------
# Shared in-kernel math
# ----------------------------------------------------------------------------
def _layernorm(x, gamma, beta, eps=1e-5):
    mu = jnp.mean(x, axis=-1, keepdims=True)
    var = jnp.mean((x - mu) ** 2, axis=-1, keepdims=True)
    return (x - mu) * lax.rsqrt(var + eps) * gamma + beta


def _onehot_bf16(ids, n_rows):
    """ids: (tb, 1) int32 -> (tb, n_rows) bf16 one-hot (exact 0/1 values)."""
    iota = lax.broadcasted_iota(jnp.int32, (ids.shape[0], n_rows), 1)
    return jnp.where(ids == iota, 1.0, 0.0).astype(jnp.bfloat16)


def _gather_rows(onehot, hi_ref, lo_ref):
    """Exact (to ~2^-17 rel) f32 row gather via two native bf16 MXU matmuls."""
    hi = jnp.dot(onehot, hi_ref[...], preferred_element_type=jnp.float32)
    lo = jnp.dot(onehot, lo_ref[...], preferred_element_type=jnp.float32)
    return hi + lo


def _mf_tail(users, movies, ages,
             ug, ub, mg, mb, ag, ab,
             ubias, mbias, gbias, o_ref):
    nf = users.shape[-1]
    users = jnp.maximum(users, 0.0)      # relu(relu(x)) == relu(x)
    movies = jnp.maximum(movies, 0.0)
    ages = jnp.maximum(ages, 0.0)
    users = _layernorm(users, ug, ub)
    movies = _layernorm(movies, mg, mb)
    ages = _layernorm(ages, ag, ab)
    combined = users * (movies * ages)
    dot = jnp.sum(combined, axis=-1, keepdims=True)          # (tb, 1), XLU reduce
    dot = dot * (1.0 / float(nf) ** 0.5)
    pred = dot + ubias + mbias + gbias
    o_ref[...] = jnp.clip(pred, -0.1, 1.1)


# ----------------------------------------------------------------------------
# Fast path: all factor tables VMEM-resident, one-hot MXU gather (no row DMAs)
# ----------------------------------------------------------------------------
def mf_resident_kernel(uid_ref, mid_ref, aid_ref,                 # (tb,1) int32
                       ufh_ref, ufl_ref, mfh_ref, mfl_ref,        # resident hi/lo bf16
                       afh_ref, afl_ref,
                       ug_ref, ub_ref, mg_ref, mb_ref, ag_ref, ab_ref,  # (1,F) LN affine
                       ubias_ref, mbias_ref,                      # (tb,1) gathered biases
                       gbias_ref,                                 # (1,) SMEM
                       o_ref):                                    # (tb,1) predictions
    oh_u = _onehot_bf16(uid_ref[...], ufh_ref.shape[0])
    oh_m = _onehot_bf16(mid_ref[...], mfh_ref.shape[0])
    oh_a = _onehot_bf16(aid_ref[...], afh_ref.shape[0])

    users = _gather_rows(oh_u, ufh_ref, ufl_ref)
    movies = _gather_rows(oh_m, mfh_ref, mfl_ref)
    ages = _gather_rows(oh_a, afh_ref, afl_ref)

    _mf_tail(users, movies, ages,
             ug_ref[...], ub_ref[...], mg_ref[...], mb_ref[...],
             ag_ref[...], ab_ref[...],
             ubias_ref[...], mbias_ref[...], gbias_ref[0], o_ref)


# ----------------------------------------------------------------------------
# Large-table path: per-row DMA gather for user/movie, resident age table
# ----------------------------------------------------------------------------
_ISSUE_UNROLL = 8


def mf_dma_kernel(uid_smem, mid_smem,                       # scalar-prefetch ids (SMEM)
                  aid_ref,                                  # (tb,1) int32 VMEM
                  ufac_hbm, mfac_hbm,                       # big factor tables (HBM, pl.ANY)
                  afh_ref, afl_ref,                         # resident age table hi/lo bf16
                  ug_ref, ub_ref, mg_ref, mb_ref, ag_ref, ab_ref,
                  ubias_ref, mbias_ref, gbias_ref,
                  o_ref,
                  u_scr, m_scr, sem):
    tb = u_scr.shape[0]
    base = pl.program_id(0) * tb

    # Fused row gather: chunked issue loop with a static 8-wide unroll so the
    # scheduler co-issues SMEM id loads / address math with DMA-descriptor pushes.
    @pl.loop(0, tb // _ISSUE_UNROLL)
    def _(c):
        r0 = c * _ISSUE_UNROLL
        for rr in range(_ISSUE_UNROLL):                     # static unroll
            r = r0 + rr
            pltpu.make_async_copy(ufac_hbm.at[pl.ds(uid_smem[base + r], 1)],
                                  u_scr.at[pl.ds(r, 1)], sem.at[0]).start()
            pltpu.make_async_copy(mfac_hbm.at[pl.ds(mid_smem[base + r], 1)],
                                  m_scr.at[pl.ds(r, 1)], sem.at[1]).start()

    # Aggregated waits: DMA semaphores count bytes, so one descriptor covering
    # the whole (tb, F) scratch waits for all tb row copies at once (replaces
    # the previous per-row wait loop).  src is a dummy — only dst + byte count
    # matter for a wait; the dst ref also orders the reads below after the DMA.
    pltpu.make_async_copy(m_scr, u_scr, sem.at[0]).wait()
    pltpu.make_async_copy(u_scr, m_scr, sem.at[1]).wait()

    # Age table is tiny: VMEM-resident, gathered with a one-hot MXU matmul
    # (no DMA at all -> one third fewer descriptors than before).
    oh_a = _onehot_bf16(aid_ref[...], afh_ref.shape[0])
    ages = _gather_rows(oh_a, afh_ref, afl_ref)

    _mf_tail(u_scr[...], m_scr[...], ages,
             ug_ref[...], ub_ref[...], mg_ref[...], mb_ref[...],
             ag_ref[...], ab_ref[...],
             ubias_ref[...], mbias_ref[...], gbias_ref[0], o_ref)


# ----------------------------------------------------------------------------
# Host-side wrapper
# ----------------------------------------------------------------------------
_TB_CAP = 1024                      # raised from 512: VMEM use is tiny even on v7x
_RESIDENT_MAX_ROWS = 4096           # (tb, rows) one-hot temporaries must stay small
_RESIDENT_BUDGET_BYTES = 24 << 20   # conservative vs. v7x's 32 MiB default scoped VMEM


def _pick_tile(batch):
    # >= 2 grid steps whenever the batch allows so ("parallel",) semantics gives
    # both v7x TensorCores work; 8-sublane aligned; capped at _TB_CAP.
    if batch <= 8:
        return 8
    half = -(-batch // 2)
    return max(8, min(_TB_CAP, _round_up(half, 8)))


def _pad_rows(t, mult=16):
    rows = t.shape[0]
    rp = _round_up(max(rows, mult), mult)
    return jnp.pad(t, ((0, rp - rows), (0, 0)))


def _split_hi_lo(t):
    """f32 table -> (hi, lo) bf16 pair with hi + lo == t to ~2^-17 relative."""
    hi = t.astype(jnp.bfloat16)
    lo = (t - hi.astype(jnp.float32)).astype(jnp.bfloat16)
    return hi, lo


def matrix_fact_forward(user_ids, movie_ids, age_bucket_ids,
                        user_factors, movie_factors, age_factors,
                        user_gamma, user_beta, movie_gamma, movie_beta,
                        age_gamma, age_beta,
                        user_bias_tbl, movie_bias_tbl, global_bias,
                        *, tb=None, force_dma_gather=False):
    """MatrixFact forward.  Returns (B,) float32 predictions in [-0.1, 1.1]."""
    B = int(user_ids.shape[0])
    F = int(user_factors.shape[1])

    tb = _pick_tile(B) if tb is None else max(8, (int(tb) // 8) * 8)
    bp = _round_up(B, tb)
    grid = (bp // tb,)

    def pad_ids_2d(x):
        return jnp.pad(x.astype(jnp.int32), (0, bp - B)).reshape(bp, 1)

    uid2 = pad_ids_2d(user_ids)
    mid2 = pad_ids_2d(movie_ids)
    aid2 = pad_ids_2d(age_bucket_ids)

    # (B, 1) bias gathers are <1% of bytes -> plain-JAX glue, exact in f32.
    ubias = jnp.pad(user_bias_tbl[user_ids].astype(jnp.float32).reshape(B, 1),
                    ((0, bp - B), (0, 0)))
    mbias = jnp.pad(movie_bias_tbl[movie_ids].astype(jnp.float32).reshape(B, 1),
                    ((0, bp - B), (0, 0)))
    gb = jnp.asarray(global_bias, jnp.float32).reshape((1,))

    def ln_param(p):
        return jnp.asarray(p, jnp.float32).reshape(1, F)

    ln_params = tuple(ln_param(p) for p in
                      (user_gamma, user_beta, movie_gamma, movie_beta,
                       age_gamma, age_beta))

    uf = jnp.asarray(user_factors, jnp.float32)
    mf = jnp.asarray(movie_factors, jnp.float32)
    af = jnp.asarray(age_factors, jnp.float32)

    rows_p = [_round_up(max(t.shape[0], 16), 16) for t in (uf, mf, af)]
    resident_bytes = (2 * 2 * F * sum(rows_p)         # hi+lo bf16 tables
                      + 2 * tb * sum(rows_p)          # bf16 one-hots
                      + 4 * tb * F * 10)              # f32 intermediates (rough)
    use_resident = ((not force_dma_gather)
                    and max(rows_p) <= _RESIDENT_MAX_ROWS
                    and resident_bytes <= _RESIDENT_BUDGET_BYTES)

    out_shape = jax.ShapeDtypeStruct((bp, 1), jnp.float32)
    smem_spec = pl.BlockSpec(memory_space=pltpu.MemorySpace.SMEM)

    if use_resident:
        # --- small-table fast path: tables live in VMEM, one-hot MXU gather ---
        ufh, ufl = _split_hi_lo(_pad_rows(uf))
        mfh, mfl = _split_hi_lo(_pad_rows(mf))
        afh, afl = _split_hi_lo(_pad_rows(af))

        b1 = lambda i: (i, 0)
        const = lambda i: (0, 0)
        ln_spec = pl.BlockSpec((1, F), const)

        def table_spec(t):
            return pl.BlockSpec(t.shape, const)       # constant map -> VMEM resident

        grid_spec = pltpu.PrefetchScalarGridSpec(
            num_scalar_prefetch=0,
            grid=grid,
            in_specs=[pl.BlockSpec((tb, 1), b1),       # uid
                      pl.BlockSpec((tb, 1), b1),       # mid
                      pl.BlockSpec((tb, 1), b1),       # aid
                      table_spec(ufh), table_spec(ufl),
                      table_spec(mfh), table_spec(mfl),
                      table_spec(afh), table_spec(afl),
                      ln_spec, ln_spec, ln_spec, ln_spec, ln_spec, ln_spec,
                      pl.BlockSpec((tb, 1), b1),       # ubias
                      pl.BlockSpec((tb, 1), b1),       # mbias
                      smem_spec],                      # global bias
            out_specs=pl.BlockSpec((tb, 1), b1))

        out = pl.pallas_call(
            mf_resident_kernel,
            out_shape=out_shape,
            grid_spec=grid_spec,
            compiler_params=pltpu.CompilerParams(
                dimension_semantics=("parallel",)),
        )(uid2, mid2, aid2, ufh, ufl, mfh, mfl, afh, afl,
          *ln_params, ubias, mbias, gb)
    else:
        # --- large-table path: per-row DMA gather for user/movie tables ---
        afh, afl = _split_hi_lo(_pad_rows(af))

        b1 = lambda i, u, m: (i, 0)
        const = lambda i, u, m: (0, 0)
        ln_spec = pl.BlockSpec((1, F), const)
        any_spec = pl.BlockSpec(memory_space=pl.ANY)   # tables stay in HBM

        grid_spec = pltpu.PrefetchScalarGridSpec(
            num_scalar_prefetch=2,                     # uid, mid -> SMEM
            grid=grid,
            in_specs=[pl.BlockSpec((tb, 1), b1),       # aid
                      any_spec, any_spec,              # user/movie factor tables
                      pl.BlockSpec(afh.shape, const),  # age hi (resident)
                      pl.BlockSpec(afl.shape, const),  # age lo (resident)
                      ln_spec, ln_spec, ln_spec, ln_spec, ln_spec, ln_spec,
                      pl.BlockSpec((tb, 1), b1),       # ubias
                      pl.BlockSpec((tb, 1), b1),       # mbias
                      smem_spec],                      # global bias
            out_specs=pl.BlockSpec((tb, 1), b1),
            scratch_shapes=[pltpu.VMEM((tb, F), jnp.float32),
                            pltpu.VMEM((tb, F), jnp.float32),
                            pltpu.SemaphoreType.DMA((2,))])

        uid1 = jnp.pad(user_ids.astype(jnp.int32), (0, bp - B))
        mid1 = jnp.pad(movie_ids.astype(jnp.int32), (0, bp - B))

        out = pl.pallas_call(
            mf_dma_kernel,
            out_shape=out_shape,
            grid_spec=grid_spec,
            compiler_params=pltpu.CompilerParams(
                dimension_semantics=("parallel",)),
        )(uid1, mid1, aid2, uf, mf, afh, afl,
          *ln_params, ubias, mbias, gb)

    return out[:B, 0]


def xavier_normal(key, shape):
    fan_out, fan_in = shape  # (num_embeddings, n_factors)
    std = (2.0 / (fan_in + fan_out)) ** 0.5
    return std * jax.random.normal(key, shape, dtype=jnp.float32)


if __name__ == "__main__":
    # Small, deterministic configuration.
    n_users, n_movies, n_age_buckets = 32, 64, 10
    n_factors = 128
    batch = 13                       # ragged on purpose: exercises padding + a 2-step grid

    key = jax.random.PRNGKey(0)
    keys = jax.random.split(key, 8)

    user_factors = xavier_normal(keys[0], (n_users, n_factors))
    movie_factors = xavier_normal(keys[1], (n_movies, n_factors))
    age_factors = xavier_normal(keys[2], (n_age_buckets, n_factors))
    # Scaled-down biases so most predictions land inside the clamp window and
    # the numerical comparison is actually discriminating.
    user_bias_tbl = 0.1 * jax.random.normal(keys[3], (n_users, 1), dtype=jnp.float32)
    movie_bias_tbl = 0.1 * jax.random.normal(keys[4], (n_movies, 1), dtype=jnp.float32)
    global_bias = jnp.zeros((1,), dtype=jnp.float32)

    # LayerNorm affine params (PyTorch default init: weight=1, bias=0).
    user_gamma = jnp.ones((1, n_factors), jnp.float32)
    user_beta = jnp.zeros((1, n_factors), jnp.float32)
    movie_gamma = jnp.ones((1, n_factors), jnp.float32)
    movie_beta = jnp.zeros((1, n_factors), jnp.float32)
    age_gamma = jnp.ones((1, n_factors), jnp.float32)
    age_beta = jnp.zeros((1, n_factors), jnp.float32)

    user_ids = jax.random.randint(keys[5], (batch,), 0, n_users)
    movie_ids = jax.random.randint(keys[6], (batch,), 0, n_movies)
    age_bucket_ids = jax.random.randint(keys[7], (batch,), 0, n_age_buckets)

    args = (user_ids, movie_ids, age_bucket_ids,
            user_factors, movie_factors, age_factors,
            user_gamma, user_beta, movie_gamma, movie_beta, age_gamma, age_beta,
            user_bias_tbl, movie_bias_tbl, global_bias)

    preds_fast = matrix_fact_forward(*args)                        # resident fast path
    preds_dma = matrix_fact_forward(*args, force_dma_gather=True)  # large-table DMA path
    jax.block_until_ready((preds_fast, preds_dma))

    # Pure-JAX reference for correctness.
    def reference_forward(uids, mids, aids):
        u = jnp.maximum(user_factors[uids], 0.0)
        m = jnp.maximum(movie_factors[mids], 0.0)
        a = jnp.maximum(age_factors[aids], 0.0)

        def ln(x, g, b, eps=1e-5):
            mu = jnp.mean(x, axis=-1, keepdims=True)
            var = jnp.mean((x - mu) ** 2, axis=-1, keepdims=True)
            return (x - mu) / jnp.sqrt(var + eps) * g + b

        u = ln(u, user_gamma, user_beta)
        m = ln(m, movie_gamma, movie_beta)
        a = ln(a, age_gamma, age_beta)
        dot = jnp.sum(u * (m * a), axis=-1) / jnp.sqrt(jnp.float32(n_factors))
        pred = (dot + user_bias_tbl[uids][:, 0] + movie_bias_tbl[mids][:, 0]
                + global_bias[0])
        return jnp.clip(pred, -0.1, 1.1)

    ref = reference_forward(user_ids, movie_ids, age_bucket_ids)

    assert preds_fast.shape == (batch,) and preds_dma.shape == (batch,)
    assert bool(jnp.all(preds_fast >= -0.1)) and bool(jnp.all(preds_fast <= 1.1))
    # Fast path gathers through the bf16 hi/lo split: ~1e-5 abs error budget.
    assert bool(jnp.allclose(preds_fast, ref, atol=1e-3, rtol=1e-3)), (preds_fast, ref)
    # DMA path gathers exact f32 rows: tight tolerance.
    assert bool(jnp.allclose(preds_dma, ref, atol=1e-4, rtol=1e-4)), (preds_dma, ref)
    print("KERNEL_OK")
</pallas_src>

<mosaic_0001>
module attributes {stable_mosaic.version = 11 : i64} {
  func.func @mf_resident_kernel(%arg0: i32, %arg1: memref<8x1xi32, #tpu.memory_space<vmem>>, %arg2: memref<8x1xi32, #tpu.memory_space<vmem>>, %arg3: memref<8x1xi32, #tpu.memory_space<vmem>>, %arg4: memref<32x128xbf16, #tpu.memory_space<vmem>>, %arg5: memref<32x128xbf16, #tpu.memory_space<vmem>>, %arg6: memref<64x128xbf16, #tpu.memory_space<vmem>>, %arg7: memref<64x128xbf16, #tpu.memory_space<vmem>>, %arg8: memref<16x128xbf16, #tpu.memory_space<vmem>>, %arg9: memref<16x128xbf16, #tpu.memory_space<vmem>>, %arg10: memref<1x128xf32, #tpu.memory_space<vmem>>, %arg11: memref<1x128xf32, #tpu.memory_space<vmem>>, %arg12: memref<1x128xf32, #tpu.memory_space<vmem>>, %arg13: memref<1x128xf32, #tpu.memory_space<vmem>>, %arg14: memref<1x128xf32, #tpu.memory_space<vmem>>, %arg15: memref<1x128xf32, #tpu.memory_space<vmem>>, %arg16: memref<8x1xf32, #tpu.memory_space<vmem>>, %arg17: memref<8x1xf32, #tpu.memory_space<vmem>>, %arg18: memref<1xf32, #tpu.memory_space<smem>>, %arg19: memref<8x1xf32, #tpu.memory_space<vmem>>) attributes {dimension_semantics = [#tpu.dimension_semantics<parallel>], iteration_bounds = array<i64: 2>, scalar_prefetch = 0 : i64, scratch_operands = 0 : i64, tpu.core_type = #tpu.core_type<tc>, window_params = [{transform_indices = @transform_0, window_bounds = array<i64: 8, 1>}, {transform_indices = @transform_1, window_bounds = array<i64: 8, 1>}, {transform_indices = @transform_2, window_bounds = array<i64: 8, 1>}, {pipeline_mode = #tpu.pipeline_mode<synchronous>, transform_indices = @transform_3, window_bounds = array<i64: 32, 128>}, {pipeline_mode = #tpu.pipeline_mode<synchronous>, transform_indices = @transform_4, window_bounds = array<i64: 32, 128>}, {pipeline_mode = #tpu.pipeline_mode<synchronous>, transform_indices = @transform_5, window_bounds = array<i64: 64, 128>}, {pipeline_mode = #tpu.pipeline_mode<synchronous>, transform_indices = @transform_6, window_bounds = array<i64: 64, 128>}, {pipeline_mode = #tpu.pipeline_mode<synchronous>, transform_indices = @transform_7, window_bounds = array<i64: 16, 128>}, {pipeline_mode = #tpu.pipeline_mode<synchronous>, transform_indices = @transform_8, window_bounds = array<i64: 16, 128>}, {pipeline_mode = #tpu.pipeline_mode<synchronous>, transform_indices = @transform_9, window_bounds = array<i64: 1, 128>}, {pipeline_mode = #tpu.pipeline_mode<synchronous>, transform_indices = @transform_10, window_bounds = array<i64: 1, 128>}, {pipeline_mode = #tpu.pipeline_mode<synchronous>, transform_indices = @transform_11, window_bounds = array<i64: 1, 128>}, {pipeline_mode = #tpu.pipeline_mode<synchronous>, transform_indices = @transform_12, window_bounds = array<i64: 1, 128>}, {pipeline_mode = #tpu.pipeline_mode<synchronous>, transform_indices = @transform_13, window_bounds = array<i64: 1, 128>}, {pipeline_mode = #tpu.pipeline_mode<synchronous>, transform_indices = @transform_14, window_bounds = array<i64: 1, 128>}, {transform_indices = @transform_15, window_bounds = array<i64: 8, 1>}, {transform_indices = @transform_16, window_bounds = array<i64: 8, 1>}, {transform_indices = @transform_17, window_bounds = array<i64: 1>}, {transform_indices = @transform_18, window_bounds = array<i64: 8, 1>}]} {
    %c0 = arith.constant 0 : index
    %c0_0 = arith.constant 0 : index
    %0 = vector.load %arg1[%c0, %c0_0] : memref<8x1xi32, #tpu.memory_space<vmem>>, vector<8x1xi32>
    %1 = tpu.iota {dimensions = array<i32: 1>} : vector<8x32xi32>
    %2 = vector.broadcast %0 : vector<8x1xi32> to vector<8x32xi32>
    %3 = arith.cmpi eq, %2, %1 : vector<8x32xi32>
    %cst = arith.constant 1.000000e+00 : f32
    %cst_1 = arith.constant 0.000000e+00 : f32
    %4 = vector.broadcast %cst : f32 to vector<8x32xf32>
    %5 = vector.broadcast %cst_1 : f32 to vector<8x32xf32>
    %6 = arith.select %3, %4, %5 : vector<8x32xi1>, vector<8x32xf32>
    %7 = arith.truncf %6 : vector<8x32xf32> to vector<8x32xbf16>
    %c0_2 = arith.constant 0 : index
    %c0_3 = arith.constant 0 : index
    %8 = vector.load %arg2[%c0_2, %c0_3] : memref<8x1xi32, #tpu.memory_space<vmem>>, vector<8x1xi32>
    %9 = tpu.iota {dimensions = array<i32: 1>} : vector<8x64xi32>
    %10 = vector.broadcast %8 : vector<8x1xi32> to vector<8x64xi32>
    %11 = arith.cmpi eq, %10, %9 : vector<8x64xi32>
    %cst_4 = arith.constant 1.000000e+00 : f32
    %cst_5 = arith.constant 0.000000e+00 : f32
    %12 = vector.broadcast %cst_4 : f32 to vector<8x64xf32>
    %13 = vector.broadcast %cst_5 : f32 to vector<8x64xf32>
    %14 = arith.select %11, %12, %13 : vector<8x64xi1>, vector<8x64xf32>
    %15 = arith.truncf %14 : vector<8x64xf32> to vector<8x64xbf16>
    %c0_6 = arith.constant 0 : index
    %c0_7 = arith.constant 0 : index
    %16 = vector.load %arg3[%c0_6, %c0_7] : memref<8x1xi32, #tpu.memory_space<vmem>>, vector<8x1xi32>
    %17 = tpu.iota {dimensions = array<i32: 1>} : vector<8x16xi32>
    %18 = vector.broadcast %16 : vector<8x1xi32> to vector<8x16xi32>
    %19 = arith.cmpi eq, %18, %17 : vector<8x16xi32>
    %cst_8 = arith.constant 1.000000e+00 : f32
    %cst_9 = arith.constant 0.000000e+00 : f32
    %20 = vector.broadcast %cst_8 : f32 to vector<8x16xf32>
    %21 = vector.broadcast %cst_9 : f32 to vector<8x16xf32>
    %22 = arith.select %19, %20, %21 : vector<8x16xi1>, vector<8x16xf32>
    %23 = arith.truncf %22 : vector<8x16xf32> to vector<8x16xbf16>
    %c0_10 = arith.constant 0 : index
    %c0_11 = arith.constant 0 : index
    %24 = vector.load %arg4[%c0_10, %c0_11] : memref<32x128xbf16, #tpu.memory_space<vmem>>, vector<32x128xbf16>
    %cst_12 = arith.constant dense<0.000000e+00> : vector<8x128xf32>
    %25 = tpu.matmul %7, %24, %cst_12 {dimension_numbers = #tpu.dot_dimension_numbers<[1], [0], [0], [1], [0, 0, 1, 1], [], []>} : vector<8x32xbf16>, vector<32x128xbf16>, vector<8x128xf32> -> vector<8x128xf32>
    %c0_13 = arith.constant 0 : index
    %c0_14 = arith.constant 0 : index
    %26 = vector.load %arg5[%c0_13, %c0_14] : memref<32x128xbf16, #tpu.memory_space<vmem>>, vector<32x128xbf16>
    %cst_15 = arith.constant dense<0.000000e+00> : vector<8x128xf32>
    %27 = tpu.matmul %7, %26, %cst_15 {dimension_numbers = #tpu.dot_dimension_numbers<[1], [0], [0], [1], [0, 0, 1, 1], [], []>} : vector<8x32xbf16>, vector<32x128xbf16>, vector<8x128xf32> -> vector<8x128xf32>
    %28 = arith.addf %25, %27 : vector<8x128xf32>
    %c0_16 = arith.constant 0 : index
    %c0_17 = arith.constant 0 : index
    %29 = vector.load %arg6[%c0_16, %c0_17] : memref<64x128xbf16, #tpu.memory_space<vmem>>, vector<64x128xbf16>
    %cst_18 = arith.constant dense<0.000000e+00> : vector<8x128xf32>
    %30 = tpu.matmul %15, %29, %cst_18 {dimension_numbers = #tpu.dot_dimension_numbers<[1], [0], [0], [1], [0, 0, 1, 1], [], []>} : vector<8x64xbf16>, vector<64x128xbf16>, vector<8x128xf32> -> vector<8x128xf32>
    %c0_19 = arith.constant 0 : index
    %c0_20 = arith.constant 0 : index
    %31 = vector.load %arg7[%c0_19, %c0_20] : memref<64x128xbf16, #tpu.memory_space<vmem>>, vector<64x128xbf16>
    %cst_21 = arith.constant dense<0.000000e+00> : vector<8x128xf32>
    %32 = tpu.matmul %15, %31, %cst_21 {dimension_numbers = #tpu.dot_dimension_numbers<[1], [0], [0], [1], [0, 0, 1, 1], [], []>} : vector<8x64xbf16>, vector<64x128xbf16>, vector<8x128xf32> -> vector<8x128xf32>
    %33 = arith.addf %30, %32 : vector<8x128xf32>
    %c0_22 = arith.constant 0 : index
    %c0_23 = arith.constant 0 : index
    %34 = vector.load %arg8[%c0_22, %c0_23] : memref<16x128xbf16, #tpu.memory_space<vmem>>, vector<16x128xbf16>
    %cst_24 = arith.constant dense<0.000000e+00> : vector<8x128xf32>
    %35 = tpu.matmul %23, %34, %cst_24 {dimension_numbers = #tpu.dot_dimension_numbers<[1], [0], [0], [1], [0, 0, 1, 1], [], []>} : vector<8x16xbf16>, vector<16x128xbf16>, vector<8x128xf32> -> vector<8x128xf32>
    %c0_25 = arith.constant 0 : index
    %c0_26 = arith.constant 0 : index
    %36 = vector.load %arg9[%c0_25, %c0_26] : memref<16x128xbf16, #tpu.memory_space<vmem>>, vector<16x128xbf16>
    %cst_27 = arith.constant dense<0.000000e+00> : vector<8x128xf32>
    %37 = tpu.matmul %23, %36, %cst_27 {dimension_numbers = #tpu.dot_dimension_numbers<[1], [0], [0], [1], [0, 0, 1, 1], [], []>} : vector<8x16xbf16>, vector<16x128xbf16>, vector<8x128xf32> -> vector<8x128xf32>
    %38 = arith.addf %35, %37 : vector<8x128xf32>
    %c0_28 = arith.constant 0 : index
    %c0_29 = arith.constant 0 : index
    %39 = vector.load %arg10[%c0_28, %c0_29] : memref<1x128xf32, #tpu.memory_space<vmem>>, vector<1x128xf32>
    %c0_30 = arith.constant 0 : index
    %c0_31 = arith.constant 0 : index
    %40 = vector.load %arg11[%c0_30, %c0_31] : memref<1x128xf32, #tpu.memory_space<vmem>>, vector<1x128xf32>
    %c0_32 = arith.constant 0 : index
    %c0_33 = arith.constant 0 : index
    %41 = vector.load %arg12[%c0_32, %c0_33] : memref<1x128xf32, #tpu.memory_space<vmem>>, vector<1x128xf32>
    %c0_34 = arith.constant 0 : index
    %c0_35 = arith.constant 0 : index
    %42 = vector.load %arg13[%c0_34, %c0_35] : memref<1x128xf32, #tpu.memory_space<vmem>>, vector<1x128xf32>
    %c0_36 = arith.constant 0 : index
    %c0_37 = arith.constant 0 : index
    %43 = vector.load %arg14[%c0_36, %c0_37] : memref<1x128xf32, #tpu.memory_space<vmem>>, vector<1x128xf32>
    %c0_38 = arith.constant 0 : index
    %c0_39 = arith.constant 0 : index
    %44 = vector.load %arg15[%c0_38, %c0_39] : memref<1x128xf32, #tpu.memory_space<vmem>>, vector<1x128xf32>
    %c0_40 = arith.constant 0 : index
    %c0_41 = arith.constant 0 : index
    %45 = vector.load %arg16[%c0_40, %c0_41] : memref<8x1xf32, #tpu.memory_space<vmem>>, vector<8x1xf32>
    %c0_42 = arith.constant 0 : index
    %c0_43 = arith.constant 0 : index
    %46 = vector.load %arg17[%c0_42, %c0_43] : memref<8x1xf32, #tpu.memory_space<vmem>>, vector<8x1xf32>
    %c0_44 = arith.constant 0 : index
    %47 = memref.load %arg18[%c0_44] : memref<1xf32, #tpu.memory_space<smem>>
    %cst_45 = arith.constant 0.000000e+00 : f32
    %48 = vector.broadcast %cst_45 : f32 to vector<8x128xf32>
    %49 = arith.maximumf %28, %48 : vector<8x128xf32>
    %cst_46 = arith.constant 0.000000e+00 : f32
    %50 = vector.broadcast %cst_46 : f32 to vector<8x128xf32>
    %51 = arith.maximumf %33, %50 : vector<8x128xf32>
    %cst_47 = arith.constant 0.000000e+00 : f32
    %52 = vector.broadcast %cst_47 : f32 to vector<8x128xf32>
    %53 = arith.maximumf %38, %52 : vector<8x128xf32>
    %cst_48 = arith.constant dense<0.000000e+00> : vector<8xf32>
    %54 = vector.multi_reduction <add>, %49, %cst_48 [1] : vector<8x128xf32> to vector<8xf32>
    %55 = vector.shape_cast %54 : vector<8xf32> to vector<8x1xf32>
    %cst_49 = arith.constant 1.280000e+02 : f32
    %56 = vector.broadcast %cst_49 : f32 to vector<8x1xf32>
    %57 = arith.divf %55, %56 : vector<8x1xf32>
    %58 = vector.broadcast %57 : vector<8x1xf32> to vector<8x128xf32>
    %59 = arith.subf %49, %58 : vector<8x128xf32>
    %60 = arith.mulf %59, %59 : vector<8x128xf32>
    %cst_50 = arith.constant dense<0.000000e+00> : vector<8xf32>
    %61 = vector.multi_reduction <add>, %60, %cst_50 [1] : vector<8x128xf32> to vector<8xf32>
    %62 = vector.shape_cast %61 : vector<8xf32> to vector<8x1xf32>
    %cst_51 = arith.constant 1.280000e+02 : f32
    %63 = vector.broadcast %cst_51 : f32 to vector<8x1xf32>
    %64 = arith.divf %62, %63 : vector<8x1xf32>
    %65 = vector.broadcast %57 : vector<8x1xf32> to vector<8x128xf32>
    %66 = arith.subf %49, %65 : vector<8x128xf32>
    %cst_52 = arith.constant 9.99999974E-6 : f32
    %67 = vector.broadcast %cst_52 : f32 to vector<8x1xf32>
    %68 = arith.addf %64, %67 : vector<8x1xf32>
    %69 = math.rsqrt %68 : vector<8x1xf32>
    %70 = vector.broadcast %69 : vector<8x1xf32> to vector<8x128xf32>
    %71 = arith.mulf %66, %70 : vector<8x128xf32>
    %72 = vector.broadcast %39 : vector<1x128xf32> to vector<8x128xf32>
    %73 = arith.mulf %71, %72 : vector<8x128xf32>
    %74 = vector.broadcast %40 : vector<1x128xf32> to vector<8x128xf32>
    %75 = arith.addf %73, %74 : vector<8x128xf32>
    %cst_53 = arith.constant dense<0.000000e+00> : vector<8xf32>
    %76 = vector.multi_reduction <add>, %51, %cst_53 [1] : vector<8x128xf32> to vector<8xf32>
    %77 = vector.shape_cast %76 : vector<8xf32> to vector<8x1xf32>
    %cst_54 = arith.constant 1.280000e+02 : f32
    %78 = vector.broadcast %cst_54 : f32 to vector<8x1xf32>
    %79 = arith.divf %77, %78 : vector<8x1xf32>
    %80 = vector.broadcast %79 : vector<8x1xf32> to vector<8x128xf32>
    %81 = arith.subf %51, %80 : vector<8x128xf32>
    %82 = arith.mulf %81, %81 : vector<8x128xf32>
    %cst_55 = arith.constant dense<0.000000e+00> : vector<8xf32>
    %83 = vector.multi_reduction <add>, %82, %cst_55 [1] : vector<8x128xf32> to vector<8xf32>
    %84 = vector.shape_cast %83 : vector<8xf32> to vector<8x1xf32>
    %cst_56 = arith.constant 1.280000e+02 : f32
    %85 = vector.broadcast %cst_56 : f32 to vector<8x1xf32>
    %86 = arith.divf %84, %85 : vector<8x1xf32>
    %87 = vector.broadcast %79 : vector<8x1xf32> to vector<8x128xf32>
    %88 = arith.subf %51, %87 : vector<8x128xf32>
    %cst_57 = arith.constant 9.99999974E-6 : f32
    %89 = vector.broadcast %cst_57 : f32 to vector<8x1xf32>
    %90 = arith.addf %86, %89 : vector<8x1xf32>
    %91 = math.rsqrt %90 : vector<8x1xf32>
    %92 = vector.broadcast %91 : vector<8x1xf32> to vector<8x128xf32>
    %93 = arith.mulf %88, %92 : vector<8x128xf32>
    %94 = vector.broadcast %41 : vector<1x128xf32> to vector<8x128xf32>
    %95 = arith.mulf %93, %94 : vector<8x128xf32>
    %96 = vector.broadcast %42 : vector<1x128xf32> to vector<8x128xf32>
    %97 = arith.addf %95, %96 : vector<8x128xf32>
    %cst_58 = arith.constant dense<0.000000e+00> : vector<8xf32>
    %98 = vector.multi_reduction <add>, %53, %cst_58 [1] : vector<8x128xf32> to vector<8xf32>
    %99 = vector.shape_cast %98 : vector<8xf32> to vector<8x1xf32>
    %cst_59 = arith.constant 1.280000e+02 : f32
    %100 = vector.broadcast %cst_59 : f32 to vector<8x1xf32>
    %101 = arith.divf %99, %100 : vector<8x1xf32>
    %102 = vector.broadcast %101 : vector<8x1xf32> to vector<8x128xf32>
    %103 = arith.subf %53, %102 : vector<8x128xf32>
    %104 = arith.mulf %103, %103 : vector<8x128xf32>
    %cst_60 = arith.constant dense<0.000000e+00> : vector<8xf32>
    %105 = vector.multi_reduction <add>, %104, %cst_60 [1] : vector<8x128xf32> to vector<8xf32>
    %106 = vector.shape_cast %105 : vector<8xf32> to vector<8x1xf32>
    %cst_61 = arith.constant 1.280000e+02 : f32
    %107 = vector.broadcast %cst_61 : f32 to vector<8x1xf32>
    %108 = arith.divf %106, %107 : vector<8x1xf32>
    %109 = vector.broadcast %101 : vector<8x1xf32> to vector<8x128xf32>
    %110 = arith.subf %53, %109 : vector<8x128xf32>
    %cst_62 = arith.constant 9.99999974E-6 : f32
    %111 = vector.broadcast %cst_62 : f32 to vector<8x1xf32>
    %112 = arith.addf %108, %111 : vector<8x1xf32>
    %113 = math.rsqrt %112 : vector<8x1xf32>
    %114 = vector.broadcast %113 : vector<8x1xf32> to vector<8x128xf32>
    %115 = arith.mulf %110, %114 : vector<8x128xf32>
    %116 = vector.broadcast %43 : vector<1x128xf32> to vector<8x128xf32>
    %117 = arith.mulf %115, %116 : vector<8x128xf32>
    %118 = vector.broadcast %44 : vector<1x128xf32> to vector<8x128xf32>
    %119 = arith.addf %117, %118 : vector<8x128xf32>
    %120 = arith.mulf %97, %119 : vector<8x128xf32>
    %121 = arith.mulf %75, %120 : vector<8x128xf32>
    %cst_63 = arith.constant dense<0.000000e+00> : vector<8xf32>
    %122 = vector.multi_reduction <add>, %121, %cst_63 [1] : vector<8x128xf32> to vector<8xf32>
    %123 = vector.shape_cast %122 : vector<8xf32> to vector<8x1xf32>
    %cst_64 = arith.constant 0.0883883461 : f32
    %124 = vector.broadcast %cst_64 : f32 to vector<8x1xf32>
    %125 = arith.mulf %123, %124 : vector<8x1xf32>
    %126 = arith.addf %125, %45 : vector<8x1xf32>
    %127 = arith.addf %126, %46 : vector<8x1xf32>
    %128 = vector.broadcast %47 : f32 to vector<8x1xf32>
    %129 = arith.addf %127, %128 : vector<8x1xf32>
    %cst_65 = arith.constant -1.000000e-01 : f32
    %cst_66 = arith.constant 1.100000e+00 : f32
    %130 = vector.broadcast %cst_65 : f32 to vector<8x1xf32>
    %131 = arith.maximumf %130, %129 : vector<8x1xf32>
    %132 = vector.broadcast %cst_66 : f32 to vector<8x1xf32>
    %133 = arith.minimumf %132, %131 : vector<8x1xf32>
    %c0_67 = arith.constant 0 : index
    %c0_68 = arith.constant 0 : index
    %134 = vector.load %arg19[%c0_67, %c0_68] : memref<8x1xf32, #tpu.memory_space<vmem>>, vector<8x1xf32>
    tpu.vector_store %arg19[%c0_67, %c0_68], %133 {strides = array<i32>} : memref<8x1xf32, #tpu.memory_space<vmem>>, vector<8x1xf32>,
    return
  }
  func.func @transform_0(%arg0: i32) -> (i32, i32) {
    %c0_i32 = arith.constant 0 : i32
    %c0_i32_0 = arith.constant 0 : i32
    return %arg0, %c0_i32 : i32, i32
  }
  func.func @transform_1(%arg0: i32) -> (i32, i32) {
    %c0_i32 = arith.constant 0 : i32
    %c0_i32_0 = arith.constant 0 : i32
    return %arg0, %c0_i32 : i32, i32
  }
  func.func @transform_2(%arg0: i32) -> (i32, i32) {
    %c0_i32 = arith.constant 0 : i32
    %c0_i32_0 = arith.constant 0 : i32
    return %arg0, %c0_i32 : i32, i32
  }
  func.func @transform_3(%arg0: i32) -> (i32, i32) {
    %c0_i32 = arith.constant 0 : i32
    %c0_i32_0 = arith.constant 0 : i32
    %c0_i32_1 = arith.constant 0 : i32
    return %c0_i32, %c0_i32_0 : i32, i32
  }
  func.func @transform_4(%arg0: i32) -> (i32, i32) {
    %c0_i32 = arith.constant 0 : i32
    %c0_i32_0 = arith.constant 0 : i32
    %c0_i32_1 = arith.constant 0 : i32
    return %c0_i32, %c0_i32_0 : i32, i32
  }
  func.func @transform_5(%arg0: i32) -> (i32, i32) {
    %c0_i32 = arith.constant 0 : i32
    %c0_i32_0 = arith.constant 0 : i32
    %c0_i32_1 = arith.constant 0 : i32
    return %c0_i32, %c0_i32_0 : i32, i32
  }
  func.func @transform_6(%arg0: i32) -> (i32, i32) {
    %c0_i32 = arith.constant 0 : i32
    %c0_i32_0 = arith.constant 0 : i32
    %c0_i32_1 = arith.constant 0 : i32
    return %c0_i32, %c0_i32_0 : i32, i32
  }
  func.func @transform_7(%arg0: i32) -> (i32, i32) {
    %c0_i32 = arith.constant 0 : i32
    %c0_i32_0 = arith.constant 0 : i32
    %c0_i32_1 = arith.constant 0 : i32
    return %c0_i32, %c0_i32_0 : i32, i32
  }
  func.func @transform_8(%arg0: i32) -> (i32, i32) {
    %c0_i32 = arith.constant 0 : i32
    %c0_i32_0 = arith.constant 0 : i32
    %c0_i32_1 = arith.constant 0 : i32
    return %c0_i32, %c0_i32_0 : i32, i32
  }
  func.func @transform_9(%arg0: i32) -> (i32, i32) {
    %c0_i32 = arith.constant 0 : i32
    %c0_i32_0 = arith.constant 0 : i32
    %c0_i32_1 = arith.constant 0 : i32
    return %c0_i32, %c0_i32_0 : i32, i32
  }
  func.func @transform_10(%arg0: i32) -> (i32, i32) {
    %c0_i32 = arith.constant 0 : i32
    %c0_i32_0 = arith.constant 0 : i32
    %c0_i32_1 = arith.constant 0 : i32
    return %c0_i32, %c0_i32_0 : i32, i32
  }
  func.func @transform_11(%arg0: i32) -> (i32, i32) {
    %c0_i32 = arith.constant 0 : i32
    %c0_i32_0 = arith.constant 0 : i32
    %c0_i32_1 = arith.constant 0 : i32
    return %c0_i32, %c0_i32_0 : i32, i32
  }
  func.func @transform_12(%arg0: i32) -> (i32, i32) {
    %c0_i32 = arith.constant 0 : i32
    %c0_i32_0 = arith.constant 0 : i32
    %c0_i32_1 = arith.constant 0 : i32
    return %c0_i32, %c0_i32_0 : i32, i32
  }
  func.func @transform_13(%arg0: i32) -> (i32, i32) {
    %c0_i32 = arith.constant 0 : i32
    %c0_i32_0 = arith.constant 0 : i32
    %c0_i32_1 = arith.constant 0 : i32
    return %c0_i32, %c0_i32_0 : i32, i32
  }
  func.func @transform_14(%arg0: i32) -> (i32, i32) {
    %c0_i32 = arith.constant 0 : i32
    %c0_i32_0 = arith.constant 0 : i32
    %c0_i32_1 = arith.constant 0 : i32
    return %c0_i32, %c0_i32_0 : i32, i32
  }
  func.func @transform_15(%arg0: i32) -> (i32, i32) {
    %c0_i32 = arith.constant 0 : i32
    %c0_i32_0 = arith.constant 0 : i32
    return %arg0, %c0_i32 : i32, i32
  }
  func.func @transform_16(%arg0: i32) -> (i32, i32) {
    %c0_i32 = arith.constant 0 : i32
    %c0_i32_0 = arith.constant 0 : i32
    return %arg0, %c0_i32 : i32, i32
  }
  func.func @transform_17(%arg0: i32) -> i32 {
    %c0_i32 = arith.constant 0 : i32
    %c0_i32_0 = arith.constant 0 : i32
    return %c0_i32 : i32
  }
  func.func @transform_18(%arg0: i32) -> (i32, i32) {
    %c0_i32 = arith.constant 0 : i32
    %c0_i32_0 = arith.constant 0 : i32
    return %arg0, %c0_i32 : i32, i32
  }
}

</mosaic_0001>

<bundles_post_ra>
// kernel: tpu_custom_call.1
= control target key start
LH: loop header
LB: loop body
LE: loop exit
PB: predicated region body
PF: predicated region fallthrough
CT: control target
= control target key end

     0   :  { %s1700_s0 = inlined_call_operand.vmem [shape: s32[16,1], index: 0, kind: input, shape index: {}]   ;;  %s1701_s1 = inlined_call_operand.vmem [shape: s32[16,1], index: 1, kind: input, shape index: {}]   ;;  %s1702_s2 = inlined_call_operand.vmem [shape: s32[16,1], index: 2, kind: input, shape index: {}]   ;;  %s1703_s3 = inlined_call_operand.vmem [shape: bf16[32,128], index: 3, kind: input, shape index: {}]   ;;  %s1704_s4 = inlined_call_operand.hbm [shape: bf16[32,128], index: 4, kind: input, shape index: {}]   ;;  %s1705_s5 = inlined_call_operand.vmem [shape: bf16[64,128], index: 5, kind: input, shape index: {}]   ;;  %s1706_s6 = inlined_call_operand.vmem [shape: bf16[64,128], index: 6, kind: input, shape index: {}]   ;;  %s1707_s7 = inlined_call_operand.vmem [shape: bf16[16,128], index: 7, kind: input, shape index: {}]   ;;  %s1708_s8 = inlined_call_operand.vmem [shape: bf16[16,128], index: 8, kind: input, shape index: {}]   ;;  %s1709_s9 = inlined_call_operand.vmem [shape: f32[1,128], index: 9, kind: input, shape index: {}]   ;;  %s1710_s10 = inlined_call_operand.vmem [shape: f32[1,128], index: 10, kind: input, shape index: {}]   ;;  %s1711_s11 = inlined_call_operand.vmem [shape: f32[1,128], index: 11, kind: input, shape index: {}]   ;;  %s1712_s12 = inlined_call_operand.vmem [shape: f32[1,128], index: 12, kind: input, shape index: {}]   ;;  %s1713_s13 = inlined_call_operand.vmem [shape: f32[1,128], index: 13, kind: input, shape index: {}]   ;;  %s1714_s14 = inlined_call_operand.vmem [shape: f32[1,128], index: 14, kind: input, shape index: {}]   ;;  %s1715_s15 = inlined_call_operand.vmem [shape: f32[16,1], index: 15, kind: input, shape index: {}]   ;;  %s1716_s16 = inlined_call_operand.vmem [shape: f32[16,1], index: 16, kind: input, shape index: {}]   ;;  %s1717_s17 = inlined_call_operand.<no memory space> [shape: f32[1], index: 17, kind: input, shape index: {}]   ;;  %s1718_s18 = inlined_call_operand.vmem [shape: f32[16,1], index: 18, kind: output, shape index: {}]  }
   0x1   :  { %1719 = sst [smem:[#allocation6_spill]] %s1700_s0 }
   0x2   :  { %1720 = sst [smem:[#allocation7_spill]] %s1701_s1 }
   0x3   :  { %1721 = sst [smem:[#allocation8_spill]] %s1702_s2 }
   0x4   :  { %23 = sst [smem:[#allocation2]] %s1717_s17 }
   0x5   :  { %24 = vsyncpa [#allocation4], 0  ;;  %s1558_s29 = smov 0  }
   0x6 LB: > { %s1564_s30 = sadd.s32 4294967295, %s1452_s29   ;;  %p1259_p0 = scmp.ge.s32.totalorder %s1452_s29, 1  ;;  %s1452_s29 = sphi %s1558_s29, %s30_s29  }
   0x7   : > { %p464_p1 = scmp.lt.s32.totalorder %s1452_s29, 3  ;;  %s1454_s0 = smov [#allocation3]  }
   0x8   : > { %s479_s19 = sshll.u32 %s1454_s0, 4  ;;  %p1378_p3 = scmp.eq.s32.totalorder %s1564_s30, 0  ;;  %s480_s19 = int_to_ptr.vmem [resolvable:$true] %s479_s19 }
   0x9   : > { %p1568_p2 = pnand %p1259_p0, %p464_p1  ;;  %s1427_s1 = scalar_lea.vmem %s480_s19, 256 }
   0xa   : > { %p1428_p7 = scmp.ne.s32.totalorder %s480_s19, %s1427_s1  ;;  %p1435_p10 = scmp.lt.s32.totalorder %s480_s19, %s480_s19 }
   0xb   : > { %p1374_p4 = pneg %p1568_p2  ;;  %p1436_p11 = scmp.lt.s32.totalorder %s1427_s1, %s1427_s1 }
   0xd   : > { %p1375_p5 = pnand %p1378_p3, %p1374_p4  ;;  %p1437_p12 = por %p1436_p11, %p1435_p10 }
   0xf   : > { %p1418_p6 = pneg %p1375_p5 }
  0x11   : > { %p1430_p8 = pnand %p1428_p7, %p1418_p6 }
  0x13   : > { %p1431_p9 = pneg %p1430_p8 }
  0x15   : > { %p1438_p13 = pnand %p1437_p12, %p1431_p9 }
  0x17   : > { %1441 = shalt.err (!%p1438_p13)
}
  0x18   : > { %s1455_s20 = smov 64   ;;  %s1456_s21 = smov 4  }
  0x19   : > { %1377 = dma.hbm_to_vmem [thread:$0]  (!%p1375_p5), %s1704_s4, 256, %s480_s19, [#allocation4], %s1455_s20, %s1455_s20, %s1456_s21  }
  0x1a   : > { %563 = sbr.rel (%p1568_p2) target bundleno = 852 (0x354), region = 92 }
  0x1f   : > { %1447 = dma.done.wait (%p1378_p3), [#allocation4], 256  }
  0x20   : > { %1449 = vsyncadd (%p1378_p3), [#allocation4], 4294967040  ;;  %p631_p0 = scmp.lt.s32.totalorder %s1564_s30, 1  ;;  %v1457_v0 = vmov 0   ;;  %v1458_v1 = vmov 0.0   ;;  %s1723_s26 = sld [smem:[#allocation6_spill]]  ;;  %v657_v9 = vlaneseq }
  0x21   : > { %1394 = vset.pattern.permute.xlu0 %v1457_v0  ;;  %1395 = vset.pattern.permute.xlu1 %v1457_v0  ;;  %s1724_s19 = sld [smem:[#allocation7_spill]]  ;;  %vm1459_vm0 = vmmov 0   ;;  %v1396_v5 = vld [vmem:[#allocation3 + $0x8] sm:$0xff]   ;;  %v1398_v7 = vld [vmem:[#allocation3] sm:$0xff]   ;;  %vm699_vm2 = vcmask 261120   ;;  %v1400_v13 = vld [vmem:[%s1706_s6 + $0x18] sm:$0xff]  }
  0x22   : > { %s1727_s30 = smov (!%p631_p0, %s1564_s30), 1  ;;  %1318 = vmatprep.subr.bf16.mxu0 %v1458_v1  ;;  %1326 = vmatprep.subr.bf16.mxu1 %v1458_v1  ;;  %s1725_s21 = sld [smem:[#allocation8_spill]]  ;;  %v1397_v6 = vld [vmem:[%s1703_s3 + $0x8] sm:$0xff]   ;;  %v1399_v8 = vld [vmem:[%s1703_s3] sm:$0xff]   ;;  %v658_v10 = vand.u32 127, %v657_v9  ;;  %v1401_v14 = vld [vmem:[%s1705_s5 + $0x18] sm:$0xff]  }
  0x23   : > { %s1590_s23 = sshll.u32 %s1727_s30, 3  ;;  %1322 = vmatprep.mubr.msk.bf16.mxu0 %vm1459_vm0, %v1458_v1  ;;  %1330 = vmatprep.mubr.msk.bf16.mxu1 %vm1459_vm0, %v1458_v1  ;;  %v1402_v16 = vld [vmem:[%s1706_s6 + $0x10] sm:$0xff]   ;;  %v1404_v19 = vld [vmem:[%s1706_s6 + $0x8] sm:$0xff]   ;;  %v1406_v21 = vld [vmem:[%s1706_s6] sm:$0xff]   ;;  %vm835_vm4 = vcmask 523264   ;;  %vm953_vm6 = vcmask 130048  }
  0x24   : > { %1319 = vmatpush3.bf16.msra.mxu0 %v1396_v5  ;;  %1327 = vmatpush3.bf16.msra.mxu1 %v1397_v6  ;;  %v1403_v17 = vld [vmem:[%s1705_s5 + $0x10] sm:$0xff]   ;;  %v1405_v20 = vld [vmem:[%s1705_s5 + $0x8] sm:$0xff]   ;;  %v1407_v22 = vld [vmem:[%s1705_s5] sm:$0xff]   ;;  %s646_s20 = scalar_lea.vmem %s1715_s15, %s1590_s23  ;;  %s650_s30 = scalar_lea.vmem %s1716_s16, %s1590_s23  ;;  %vm1142_vm7 = vcmask 7168  }
  0x25   : > { %1320 = vmatprep.subr.bf16.mxu0 %v1458_v1  ;;  %1328 = vmatprep.subr.bf16.mxu1 %v1458_v1  ;;  %v1408_v25 = vld [vmem:[%s1708_s8] sm:$0xff]   ;;  %s654_s25 = scalar_lea.vmem %s1718_s18, %s1590_s23 }
  0x26   : > { %s634_s27 = scalar_lea.vmem %s1723_s26, %s1590_s23  ;;  %v1409_v26 = vld [vmem:[%s1707_s7] sm:$0xff]  }
  0x27   : > { %s638_s17 = scalar_lea.vmem %s1724_s19, %s1590_s23  ;;  %v656_v2 = vld [vmem:[%s634_s27] sm:$0xff]  ;;  %s1051_s19 = sld [smem:[#allocation2]] }
  0x28   : > { %s642_s22 = scalar_lea.vmem %s1725_s21, %s1590_s23  ;;  %v665_v3 = vld [vmem:[%s638_s17] sm:$0xff]  ;;  %660 = vperm.xlu0 %1394, %v656_v2   ;;  %1321 = vmatpush3.bf16.msra.mxu0 %v1398_v7 }
  0x29   : > { %v672_v4 = vld [vmem:[%s642_s22] sm:$0xff]  ;;  %1329 = vmatpush3.bf16.msra.mxu1 %v1399_v8  ;;  %1334 = vmatprep.subr.bf16.mxu0 %v1458_v1 }
  0x2a   : > { %674 = vperm.xlu1 %1395, %v672_v4   ;;  %1346 = vmatprep.subr.bf16.mxu1 %v1458_v1 }
  0x2c   : > { %667 = vperm.xlu0 %1394, %v665_v3  }
  0xa3   : > { %v661_v11 = vpop.permute.xlu0 %660 }
  0xa4   : > { %vm662_vm1 = vcmp.eq.s32.totalorder %v661_v11, %v658_v10 }
  0xa5   : > { %v663_v12 = vsel %vm662_vm1, 1.0, %v1458_v1  ;;  %v675_v24 = vpop.permute.xlu1 %674 }
  0xa6   : > { %v664_v15 = vpack.c.bf16 %v663_v12, %v663_v12  ;;  %vm676_vm5 = vcmp.eq.s32.totalorder %v675_v24, %v658_v10 }
  0xa7   : > { %v668_v18 = vpop.permute.xlu0 %667  ;;  %v677_v28 = vsel %vm676_vm5, 1.0, %v1458_v1 }
  0xa8   : > { %1323 = vmatmul.mubr.msk.bf16.vlgmr.msra.gmra.mxu0 %vm699_vm2, %v664_v15  ;;  %1331 = vmatmul.mubr.msk.bf16.vlgmr.msra.gmra.mxu1 %vm699_vm2, %v664_v15  ;;  %vm669_vm3 = vcmp.eq.s32.totalorder %v668_v18, %v658_v10  ;;  %v678_v29 = vpack.c.bf16 %v677_v28, %v677_v28  ;;  %v1293_v28 = vld [vmem:[%s1712_s12] ss:$0 sm:$0xff] }
  0xa9   : > { %1335 = vmatpush3.bf16.msra.mxu0 %v1400_v13  ;;  %1347 = vmatpush3.bf16.msra.mxu1 %v1401_v14  ;;  %v670_v23 = vsel %vm669_vm3, 1.0, %v1458_v1 }
  0xaa   : > { %1336 = vmatprep.subr.bf16.mxu0 %v1458_v1  ;;  %1348 = vmatprep.subr.bf16.mxu1 %v1458_v1  ;;  %v671_v27 = vpack.c.bf16 %v670_v23, %v670_v23  ;;  %v1295_v23 = vld [vmem:[%s1714_s14] ss:$0 sm:$0xff] }
  0xab   : > { %1342 = vmatprep.mubr.msk.bf16.mxu0 %vm1459_vm0, %v1458_v1  ;;  %1354 = vmatprep.mubr.msk.bf16.mxu1 %vm1459_vm0, %v1458_v1 }
  0xad   : > { %1337 = vmatpush3.bf16.msra.mxu0 %v1402_v16  ;;  %1349 = vmatpush3.bf16.msra.mxu1 %v1403_v17 }
  0xae   : > { %1338 = vmatprep.subr.bf16.mxu0 %v1458_v1  ;;  %1350 = vmatprep.subr.bf16.mxu1 %v1458_v1 }
  0xb1   : > { %1339 = vmatpush3.bf16.msra.mxu0 %v1404_v19  ;;  %1351 = vmatpush3.bf16.msra.mxu1 %v1405_v20  ;;  %v1292_v20 = vld [vmem:[%s1711_s11] ss:$0 sm:$0xff] }
  0xb2   : > { %1340 = vmatprep.subr.bf16.mxu0 %v1458_v1  ;;  %1352 = vmatprep.subr.bf16.mxu1 %v1458_v1 }
  0xb5   : > { %1341 = vmatpush3.bf16.msra.mxu0 %v1406_v21  ;;  %1353 = vmatpush3.bf16.msra.mxu1 %v1407_v22  ;;  %v1294_v21 = vld [vmem:[%s1713_s13] ss:$0 sm:$0xff] }
  0xb6   : > { %1358 = vmatprep.subr.bf16.mxu0 %v1458_v1  ;;  %1364 = vmatprep.subr.bf16.mxu1 %v1458_v1 }
  0xb8   : > { %1343 = vmatmul.mubr.msk.bf16.vlgmr.msra.gmra.mxu0 %vm835_vm4, %v671_v27  ;;  %1355 = vmatmul.mubr.msk.bf16.vlgmr.msra.gmra.mxu1 %vm835_vm4, %v671_v27  ;;  %v1290_v27 = vld [vmem:[%s1709_s9] ss:$0 sm:$0xff] }
  0xb9   : > { %1359 = vmatpush3.bf16.msra.mxu0 %v1408_v25  ;;  %1365 = vmatpush3.bf16.msra.mxu1 %v1409_v26 }
  0xba   : > { %1360 = vmatprep.mubr.msk.bf16.mxu0 %vm1459_vm0, %v1458_v1  ;;  %1366 = vmatprep.mubr.msk.bf16.mxu1 %vm1459_vm0, %v1458_v1 }
  0xc0   : > { %1361 = vmatmul.mubr.msk.bf16.vlgmr.msra.gmra.mxu0 %vm953_vm6, %v678_v29  ;;  %1367 = vmatmul.mubr.msk.bf16.vlgmr.msra.gmra.mxu1 %vm953_vm6, %v678_v29 }
 0x168   : > { %v737_v30 = vpop.f32.mrf.mxu0  ;;  %v789_v31 = vpop.f32.mrf.mxu1 }
 0x169   : > { %v790_v53 = vadd.f32 %v789_v31, %v737_v30  ;;  %v1291_v31 = vld [vmem:[%s1710_s10] ss:$0 sm:$0xff] }
 0x16a   : > { %v1324_v32 = vpop.f32.mrf.mxu0  ;;  %v1332_v33 = vpop.f32.mrf.mxu1 }
 0x16b   : > { %v1052_v59 = vmax.f32 %v790_v53, 0.0 }
 0x16c   : > { %v740_v34 = vpop.f32.mrf.mxu0  ;;  %v792_v35 = vpop.f32.mrf.mxu1 }
 0x16e   : > { %v1325_v36 = vpop.f32.mrf.mxu0  ;;  %v1333_v37 = vpop.f32.mrf.mxu1 }
 0x16f   : > { %v1049_v37 = vld [vmem:[%s646_s20] sm:$0xff] }
 0x178   : > { %v873_v38 = vpop.f32.mrf.mxu0  ;;  %v937_v39 = vpop.f32.mrf.mxu1 }
 0x179   : > { %v938_v40 = vadd.f32 %v937_v39, %v873_v38 }
 0x17a   : > { %v1344_v41 = vpop.f32.mrf.mxu0  ;;  %v1356_v42 = vpop.f32.mrf.mxu1 }
 0x17b   : > { %v1053_v43 = vmax.f32 %v938_v40, 0.0  ;;  %v1050_v40 = vld [vmem:[%s650_s30] sm:$0xff]  ;;  %v1138_v42 = vstv %s1051_s19 }
 0x17c   : > { %v876_v44 = vpop.f32.mrf.mxu0  ;;  %v940_v45 = vpop.f32.mrf.mxu1 }
 0x17d   : > { %1081 = vadd.xlane.f32.xlu1 %v1053_v43 }
 0x17e   : > { %v1345_v46 = vpop.f32.mrf.mxu0  ;;  %v1357_v47 = vpop.f32.mrf.mxu1 }
 0x180   : > { %v991_v48 = vpop.f32.mrf.mxu0  ;;  %v1037_v49 = vpop.f32.mrf.mxu1 }
 0x181   : > { %v1038_v50 = vadd.f32 %v1037_v49, %v991_v48 }
 0x182   : > { %v1362_v51 = vpop.f32.mrf.mxu0  ;;  %v1368_v52 = vpop.f32.mrf.mxu1 }
 0x183   : > { %v1054_v54 = vmax.f32 %v1038_v50, 0.0 }
 0x184   : > { %v994_v55 = vpop.f32.mrf.mxu0  ;;  %v1040_v56 = vpop.f32.mrf.mxu1 }
 0x185   : > { %1106 = vadd.xlane.f32.xlu0 %v1054_v54 }
 0x186   : > { %v1363_v57 = vpop.f32.mrf.mxu0  ;;  %v1369_v58 = vpop.f32.mrf.mxu1 }
 0x189   : > { %1055 = vadd.xlane.f32.xlu0 %v1052_v59 }
 0x206   : > { %v1082_v60 = vpop.xlane.xlu1 %1081 }
 0x207   : > { %v1083_v61 = vmul.f32 0.0078125, %v1082_v60 }
 0x209   : > { %v1084_v62 = vsub.f32 %v1053_v43, %v1083_v61 }
 0x20b   : > { %v1085_v63 = vmul.f32 %v1084_v62, %v1084_v62 }
 0x20d   : > { %1086 = vadd.xlane.f32.xlu1 %v1085_v63 }
 0x20e   : > { %v1107_v0 = vpop.xlane.xlu0 %1106 }
 0x20f   : > { %v1108_v1 = vmul.f32 0.0078125, %v1107_v0 }
 0x211   : > { %v1109_v2 = vsub.f32 %v1054_v54, %v1108_v1 }
 0x212   : > { %v1056_v3 = vpop.xlane.xlu0 %1055 }
 0x213   : > { %v1058_v4 = vmul.f32 0.0078125, %v1056_v3  ;;  %v1110_v5 = vmul.f32 %v1109_v2, %v1109_v2 }
 0x215   : > { %v1059_v6 = vsub.f32 %v1052_v59, %v1058_v4  ;;  %1111 = vadd.xlane.f32.xlu0 %v1110_v5 }
 0x217   : > { %v1060_v7 = vmul.f32 %v1059_v6, %v1059_v6 }
 0x219   : > { %1061 = vadd.xlane.f32.xlu1 %v1060_v7 }
 0x296   : > { %v1087_v8 = vpop.xlane.xlu1 %1086 }
 0x297   : > { %v1088_v9 = vmul.f32 0.0078125, %v1087_v8 }
 0x299   : > { %v1089_v10 = vadd.f32 1e-05, %v1088_v9 }
 0x29b   : > { %1410 = vrsqrt.f32 %v1089_v10 }
 0x29e   : > { %v1112_v11 = vpop.xlane.xlu0 %1111 }
 0x29f   : > { %v1113_v12 = vmul.f32 0.0078125, %v1112_v11 }
 0x2a1   : > { %v1114_v13 = vadd.f32 1e-05, %v1113_v12 }
 0x2a2   : > { %v1062_v14 = vpop.xlane.xlu1 %1061 }
 0x2a3   : > { %1412 = vrsqrt.f32 %v1114_v13  ;;  %v1063_v15 = vmul.f32 0.0078125, %v1062_v14 }
 0x2a5   : > { %v1064_v16 = vadd.f32 1e-05, %v1063_v15 }
 0x2a7   : > { %1414 = vrsqrt.f32 %v1064_v16 }
 0x2a8   : > { %v1411_v17 = vpop.eup %1410 }
 0x2a9   : > { %v1091_v18 = vmul.f32 %v1411_v17, %v1084_v62 }
 0x2ab   : > { %v1098_v24 = vmul.f32 %v1292_v20, %v1091_v18 }
 0x2ad   : > { %v1105_v33 = vadd.f32 %v1293_v28, %v1098_v24 }
 0x2b0   : > { %v1413_v19 = vpop.eup %1412 }
 0x2b1   : > { %v1116_v22 = vmul.f32 %v1413_v19, %v1109_v2 }
 0x2b3   : > { %v1123_v25 = vmul.f32 %v1294_v21, %v1116_v22 }
 0x2b4   : > { %v1415_v26 = vpop.eup %1414 }
 0x2b5   : > { %v1066_v29 = vmul.f32 %v1415_v26, %v1059_v6  ;;  %v1130_v30 = vadd.f32 %v1295_v23, %v1123_v25 }
 0x2b7   : > { %v1073_v32 = vmul.f32 %v1290_v27, %v1066_v29  ;;  %v1131_v35 = vmul.f32 %v1130_v30, %v1105_v33 }
 0x2b9   : > { %v1080_v34 = vadd.f32 %v1291_v31, %v1073_v32 }
 0x2bb   : > { %v1132_v36 = vmul.f32 %v1131_v35, %v1080_v34 }
 0x2bd   : > { %1133 = vadd.xlane.f32.xlu0 %v1132_v36 }
 0x346   : > { %v1134_v38 = vpop.xlane.xlu0 %1133 }
 0x347   : > { %v1135_v39 = vmul.f32 0.088388346, %v1134_v38 }
 0x349   : > { %v1136_v41 = vadd.f32 %v1135_v39, %v1049_v37 }
 0x34b   : > { %v1137_v43 = vadd.f32 %v1136_v41, %v1050_v40 }
 0x34d   : > { %v1139_v44 = vadd.f32 %v1138_v42, %v1137_v43 }
 0x34f   : > { %v1140_v45 = vmax.f32 %v1139_v44, -0.1 }
 0x351   : > { %v1141_v46 = vmin.f32 %v1140_v45, 1.1 }
 0x353   : > { %1143 = vst.msk [vmem:[%s654_s25] sm:$0xff] %vm1142_vm7, %v1141_v46 }
 0x354 PF: > { %s30_s29 = sadd.s32 1, %s1452_s29  }
 0x355   : > { %p27_p1 = scmp.ge.s32.totalorder %s30_s29, 4  }
 0x357   :  { %29 = sbr.rel (!%p27_p1) target bundleno = 6 (0x6), region = 139 }
 0x35c   :  { %1163 = vsyncpa [#allocation4], 1 }
 0x35d   :  { %1165 = vsyncpa [#allocation4 + $0x1], 1 }

</bundles_post_ra>
